<compile_context>
chip_gen: v6e
topology: v6e:2x2x1
jax: 0.10.0
libtpu: 0.0.40
codegen_flags: <defaults>
</compile_context>

<pallas_src>
import functools

import jax
import jax.numpy as jnp
from jax import lax
from jax.experimental import pallas as pl
from jax.experimental.pallas import tpu as pltpu


def _round_up(x, m):
    return (x + m - 1) // m * m


def _sublane_quantum(dtype):
    """Second-to-last-dim tiling quantum: 8 for f32, 16 for bf16, 32 for int8."""
    return max(8, 32 // jnp.dtype(dtype).itemsize)


def _vmem_capacity_bytes():
    """Generation-aware VMEM capacity; falls back to the smallest (v7x, 64 MiB)."""
    try:
        cap = getattr(pltpu.get_tpu_info(), "vmem_capacity_bytes", None)
        if cap:
            return int(cap)
    except Exception:
        pass
    return 64 * 1024 * 1024


def _pick_tile_r(rows, quantum, budget_rows, total_bytes):
    """Rows per block: the full extent, or a multiple of the sublane quantum."""
    if rows <= quantum:
        return rows
    cap = min(rows, max(quantum, budget_rows))
    if cap >= rows:
        # Everything fits in one block: split in two only when the work is big
        # enough that megacore sharding of the parallel row axis pays off.
        if total_bytes >= (2 << 20) and rows >= 2 * quantum:
            cap = (rows + 1) // 2
        else:
            return rows
    return max(quantum, (cap // quantum) * quantum)


def _pick_hw_chunk(hw, max_chunk):
    """Spatial chunk: a multiple of 128, preferring an exact divisor of hw."""
    max_chunk = max(128, (max_chunk // 128) * 128)
    if hw % 128 == 0:
        best = None
        for d in range(128, min(hw, max_chunk) + 1, 128):
            if hw % d == 0:
                best = d
        if best is not None:
            return best
    # No clean divisor (or hw not lane-aligned): use a lane-aligned chunk and
    # let the wrapper zero-pad the spatial axis up to a multiple of it.
    return min(max_chunk, _round_up(hw, 128))


def _avg_pool_rows_kernel(x_ref, o_ref, *, inv_hw):
    """One contiguous (TILE_R, HW) block -> (TILE_R, 1) means; no reduction axis."""
    s = jnp.sum(x_ref[...], axis=-1, keepdims=True, dtype=jnp.float32)
    o_ref[...] = (s * inv_hw).astype(o_ref.dtype)


def _avg_pool_chunked_kernel(x_ref, o_ref, acc_ref, *, inv_hw):
    """Accumulate (TILE_R, CHUNK) spatial chunks into a lane-wide f32 scratch."""
    k = pl.program_id(1)

    @pl.when(k == 0)
    def _init():
        acc_ref[...] = jnp.zeros_like(acc_ref)

    # Per-step work is plain VPU adds on 128-lane slices; the single cross-lane
    # (XLU) reduction is deferred to the finalize step, keeping the steady
    # state purely HBM-bandwidth bound.
    n_groups = x_ref.shape[-1] // 128

    def _body(j, carry):
        start = pl.multiple_of(j * 128, 128)
        acc_ref[...] += x_ref[:, pl.ds(start, 128)].astype(jnp.float32)
        return carry

    lax.fori_loop(0, n_groups, _body, 0)

    @pl.when(k == pl.num_programs(1) - 1)
    def _finalize():
        s = jnp.sum(acc_ref[...], axis=-1, keepdims=True)
        o_ref[...] = (s * inv_hw).astype(o_ref.dtype)


def flat_avg_pool(x, *, target_block_bytes=None):
    """Equivalent of Flatten()(AdaptiveAvgPool2d(1)(x)) for NCHW input -> (N, C)."""
    n, c, h, w = x.shape
    hw = h * w
    rows = n * c
    dtype = x.dtype
    itemsize = jnp.dtype(dtype).itemsize
    quantum = _sublane_quantum(dtype)
    inv_hw = 1.0 / float(hw)  # plain Python float: folded at trace time, not a captured const

    vmem_cap = _vmem_capacity_bytes()
    if target_block_bytes is None:
        # ~8 MiB blocks on v7x (64 MiB VMEM), ~16 MiB on v5e/v6e (128 MiB VMEM);
        # double-buffered inputs therefore stay well inside the budget.
        target_block_bytes = max(1 << 20, min(16 << 20, vmem_cap // 8))

    hw_lanes = _round_up(hw, 128)  # lane padding once resident in VMEM
    x2 = x.reshape(rows, hw)

    min_rows = min(rows, quantum)
    min_row_block_bytes = _round_up(min_rows, quantum) * hw_lanes * itemsize

    if min_row_block_bytes <= target_block_bytes:
        # Preferred path: full-HW row blocks -> one contiguous HBM run per
        # block, no reduction grid axis, no scratch accumulator.
        budget_rows = target_block_bytes // (hw_lanes * itemsize)
        tile_r = _pick_tile_r(rows, quantum, budget_rows, rows * hw * itemsize)
        grid = (pl.cdiv(rows, tile_r),)
        in_specs = [pl.BlockSpec((tile_r, hw), lambda i: (i, 0))]
        out_specs = pl.BlockSpec((tile_r, 1), lambda i: (i, 0))
        scratch_shapes = []
        dim_sem = ("parallel",)
        kernel = functools.partial(_avg_pool_rows_kernel, inv_hw=inv_hw)
        block_hw = hw
    else:
        # Fallback for very large H*W: minimal sublane-aligned row tile and a
        # 128-lane-aligned spatial chunk reduced into a resident f32 scratch.
        tile_r = min_rows
        max_chunk = target_block_bytes // (_round_up(tile_r, quantum) * itemsize)
        chunk = _pick_hw_chunk(hw, max_chunk)
        hw_padded = _round_up(hw, chunk)
        if hw_padded != hw:
            # Zero padding is exact: zeros do not change the sum and we divide
            # by the true H*W.
            x2 = jnp.pad(x2, ((0, 0), (0, hw_padded - hw)))
        grid = (pl.cdiv(rows, tile_r), hw_padded // chunk)
        in_specs = [pl.BlockSpec((tile_r, chunk), lambda i, k: (i, k))]
        out_specs = pl.BlockSpec((tile_r, 1), lambda i, k: (i, 0))
        scratch_shapes = [pltpu.VMEM((tile_r, 128), jnp.float32)]
        dim_sem = ("parallel", "arbitrary")
        kernel = functools.partial(_avg_pool_chunked_kernel, inv_hw=inv_hw)
        block_hw = chunk

    # VMEM budget: 2x double-buffered input blocks + output/accumulator slabs
    # (with sublane/lane padding) + headroom; clipped by the chip's capacity.
    in_block_vmem = _round_up(tile_r, quantum) * _round_up(block_hw, 128) * itemsize
    out_block_vmem = _round_up(tile_r, quantum) * 128 * itemsize
    acc_vmem = _round_up(tile_r, quantum) * 128 * 4 if scratch_shapes else 0
    needed = 2 * in_block_vmem + 2 * out_block_vmem + acc_vmem + (2 << 20)
    vmem_limit = int(max(needed, min(32 << 20, vmem_cap // 2)))

    out = pl.pallas_call(
        kernel,
        out_shape=jax.ShapeDtypeStruct((rows, 1), dtype),
        grid_spec=pltpu.PrefetchScalarGridSpec(
            num_scalar_prefetch=0,
            grid=grid,
            in_specs=in_specs,
            out_specs=out_specs,
            scratch_shapes=scratch_shapes,
        ),
        compiler_params=pltpu.CompilerParams(
            dimension_semantics=dim_sem,
            vmem_limit_bytes=vmem_limit,
        ),
    )(x2)
    return out.reshape(n, c)


if __name__ == "__main__":
    key = jax.random.PRNGKey(0)
    x = jax.random.normal(key, (2, 4, 16, 16), dtype=jnp.float32)

    out = flat_avg_pool(x)
    jax.block_until_ready(out)

    # reference: global average pool over H,W then flatten
    ref = jnp.mean(x, axis=(2, 3))
    assert out.shape == (2, 4), out.shape
    assert jnp.allclose(out, ref, atol=1e-5, rtol=1e-5), "mismatch vs reference"

    # Also exercise the chunked-reduction fallback path (forced tiny budget).
    out2 = flat_avg_pool(x, target_block_bytes=4096)
    jax.block_until_ready(out2)
    assert jnp.allclose(out2, ref, atol=1e-5, rtol=1e-5), "mismatch (chunked path)"

    print("KERNEL_OK")
</pallas_src>

<mosaic_0001>
module attributes {stable_mosaic.version = 11 : i64} {
  func.func @_avg_pool_rows_kernel(%arg0: i32, %arg1: memref<8x256xf32, #tpu.memory_space<vmem>>, %arg2: memref<8x1xf32, #tpu.memory_space<vmem>>) attributes {dimension_semantics = [#tpu.dimension_semantics<parallel>], iteration_bounds = array<i64: 1>, scalar_prefetch = 0 : i64, scratch_operands = 0 : i64, tpu.core_type = #tpu.core_type<tc>, window_params = [{transform_indices = @transform_0, window_bounds = array<i64: 8, 256>}, {transform_indices = @transform_1, window_bounds = array<i64: 8, 1>}]} {
    %c0 = arith.constant 0 : index
    %c0_0 = arith.constant 0 : index
    %0 = vector.load %arg1[%c0, %c0_0] : memref<8x256xf32, #tpu.memory_space<vmem>>, vector<8x256xf32>
    %cst = arith.constant dense<0.000000e+00> : vector<8xf32>
    %1 = vector.multi_reduction <add>, %0, %cst [1] : vector<8x256xf32> to vector<8xf32>
    %2 = vector.shape_cast %1 : vector<8xf32> to vector<8x1xf32>
    %cst_1 = arith.constant 3.906250e-03 : f32
    %3 = vector.broadcast %cst_1 : f32 to vector<8x1xf32>
    %4 = arith.mulf %2, %3 : vector<8x1xf32>
    %c0_2 = arith.constant 0 : index
    %c0_3 = arith.constant 0 : index
    %5 = vector.load %arg2[%c0_2, %c0_3] : memref<8x1xf32, #tpu.memory_space<vmem>>, vector<8x1xf32>
    tpu.vector_store %arg2[%c0_2, %c0_3], %4 {strides = array<i32>} : memref<8x1xf32, #tpu.memory_space<vmem>>, vector<8x1xf32>,
    return
  }
  func.func @transform_0(%arg0: i32) -> (i32, i32) {
    %c0_i32 = arith.constant 0 : i32
    %c0_i32_0 = arith.constant 0 : i32
    return %arg0, %c0_i32 : i32, i32
  }
  func.func @transform_1(%arg0: i32) -> (i32, i32) {
    %c0_i32 = arith.constant 0 : i32
    %c0_i32_0 = arith.constant 0 : i32
    return %arg0, %c0_i32 : i32, i32
  }
}

</mosaic_0001>

<bundles_post_ra>
// kernel: tpu_custom_call.1
= control target key start
LH: loop header
LB: loop body
LE: loop exit
PB: predicated region body
PF: predicated region fallthrough
CT: control target
= control target key end

     0   :  { %6 = vsyncpa [#allocation3], 0  ;;  %s56_s6 = smov [#allocation2]   ;;  %s73_s0 = inlined_call_operand.hbm [shape: f32[8,256], index: 0, kind: input, shape index: {}]   ;;  %s74_s1 = inlined_call_operand.vmem [shape: f32[8,1], index: 1, kind: output, shape index: {}]  }
   0x1   :  { %s13_s7 = sshll.u32 %s56_s6, 4  ;;  %s14_s7 = int_to_ptr.vmem [resolvable:$true] %s13_s7 }
   0x2   :  { %s42_s8 = scalar_lea.vmem %s14_s7, 256  ;;  %p47_p1 = scmp.lt.s32.totalorder %s14_s7, %s14_s7 }
   0x3   :  { %p43_p0 = scmp.ne.s32.totalorder %s14_s7, %s42_s8  ;;  %p48_p2 = scmp.lt.s32.totalorder %s42_s8, %s42_s8 }
   0x5   :  { %p49_p3 = por %p48_p2, %p47_p1 }
   0x7   :  { %p50_p4 = pnand %p49_p3, %p43_p0 }
   0x9   :  { %53 = shalt.err (!%p50_p4)
}
   0xa   :  { %16 = dma.hbm_to_vmem [thread:$0]  %s73_s0, 256, %s14_s7, [#allocation3]  }
   0xb   :  { %54 = dma.done.wait [#allocation3], 256  }
   0xc   :  { %55 = vsyncadd [#allocation3], 4294967040  ;;  %v20_v0 = vld [vmem:[#allocation2] sm:$0xff]  ;;  %v21_v1 = vld [vmem:[#allocation2 + $0x8] sm:$0xff]  ;;  %vm26_vm0 = vcmask 7168  }
   0xd   :  { %v22_v2 = vadd.f32 %v21_v1, %v20_v0 }
   0xf   :  { %23 = vadd.xlane.f32.xlu0 %v22_v2 }
  0x98   :  { %v24_v3 = vpop.xlane.xlu0 %23 }
  0x99   :  { %v25_v4 = vmul.f32 0.00390625, %v24_v3 }
  0x9b   :  { %27 = vst.msk [vmem:[%s74_s1] sm:$0xff] %vm26_vm0, %v25_v4 }
  0x9c   :  { %32 = vsyncpa [#allocation3], 1 }

</bundles_post_ra>
